<compile_context>
chip_gen: v7x
topology: tpu7x:2x2x1
jax: 0.10.0
libtpu: 0.0.40
codegen_flags: <defaults>
</compile_context>

<pallas_src>
import math
from functools import partial

import jax
import jax.numpy as jnp
from jax.experimental import pallas as pl
from jax.experimental.pallas import tpu as pltpu

EMBED = 64
NUM_HEADS = 4
HEAD_DIM = EMBED // NUM_HEADS
SCALE = 1.0 / math.sqrt(HEAD_DIM)
NEG_BIG = -1e30


def _mha_kernel(n_batch, x1_ref, x2_ref, wq_ref, wkv_ref, wo_ref,
                bq_ref, bkv_ref, bo_ref, out_ref):
    # Rows are (seq-major, batch-minor) interleaved: row r belongs to batch r % n_batch.
    rq = x1_ref.shape[0]          # N * Lq
    rk = x2_ref.shape[0]          # N * Lk
    e = x1_ref.shape[1]           # EMBED

    xq = x1_ref[...].astype(jnp.bfloat16)
    xk = x2_ref[...].astype(jnp.bfloat16)

    # Q projection for all (query, batch) rows; scale pre-folded into wq/bq.
    q = jnp.dot(xq, wq_ref[...], preferred_element_type=jnp.float32) + bq_ref[...]   # (rq, E) f32
    # Fused, head-interleaved K/V projection: one MXU op with a 128-lane output.
    kv = jnp.dot(xk, wkv_ref[...], preferred_element_type=jnp.float32) + bkv_ref[...]  # (rk, 2E) f32

    # One cast each for the downstream bf16 matmuls (slices below stay bf16).
    q_bf = q.astype(jnp.bfloat16)
    kv_bf = kv.astype(jnp.bfloat16)

    # Cross-batch additive mask bias, built once before the head loop.
    qi = jax.lax.broadcasted_iota(jnp.int32, (rq, rk), 0)
    ki = jax.lax.broadcasted_iota(jnp.int32, (rq, rk), 1)
    if n_batch & (n_batch - 1) == 0:          # power of two: cheap bitwise-and
        qb = qi & (n_batch - 1)
        kb = ki & (n_batch - 1)
    else:
        qb = qi % n_batch
        kb = ki % n_batch
    mask_bias = jnp.where(qb == kb, 0.0, NEG_BIG).astype(jnp.float32)   # (rq, rk)

    # Accumulate the output projection per head (single f32 accumulator chain, no lane concat).
    out = jnp.zeros((rq, e), jnp.float32) + bo_ref[...]
    for h in range(NUM_HEADS):                       # static unroll, 4 heads
        base = 2 * h * HEAD_DIM                      # head-interleaved [K_h | V_h] block
        kh = kv_bf[:, base:base + HEAD_DIM]          # (rk, Dh) bf16
        vh = kv_bf[:, base + HEAD_DIM:base + 2 * HEAD_DIM]   # (rk, Dh) bf16
        qh = q_bf[:, h * HEAD_DIM:(h + 1) * HEAD_DIM]        # (rq, Dh) bf16

        # scores: contract on the head dim of both operands -> (rq, rk), f32 accumulate
        s = jax.lax.dot_general(qh, kh, (((1,), (1,)), ((), ())),
                                preferred_element_type=jnp.float32)
        s = s + mask_bias
        s = s - jnp.max(s, axis=-1, keepdims=True)
        p = jnp.exp(s)
        inv_l = pl.reciprocal(jnp.sum(p, axis=-1, keepdims=True), approx=True)  # (rq, 1)

        # Normalize after the PV matmul (scale the small (rq, Dh) ctx, not p).
        ctx = jnp.dot(p.astype(jnp.bfloat16), vh,
                      preferred_element_type=jnp.float32) * inv_l               # (rq, Dh)
        out = out + jnp.dot(ctx.astype(jnp.bfloat16),
                            wo_ref[h * HEAD_DIM:(h + 1) * HEAD_DIM, :],
                            preferred_element_type=jnp.float32)                 # (rq, E)

    out_ref[...] = out.astype(out_ref.dtype)


@jax.jit
def mha_forward(x1_snb, x2_snb, kparams):
    """x1_snb: (Lq, N, E), x2_snb: (Lk, N, E) — PyTorch seq-first layout."""
    wq_t, wkv_t, wo_t, bq, bkv, bo = kparams
    lq, n, e = x1_snb.shape
    lk = x2_snb.shape[0]

    # Free (no-copy) reshapes: fold batch into the sublane axis, interleaved.
    x1f = x1_snb.reshape(lq * n, e)
    x2f = x2_snb.reshape(lk * n, e)

    vmem = pl.BlockSpec(memory_space=pltpu.MemorySpace.VMEM)
    out_flat = pl.pallas_call(
        partial(_mha_kernel, n),
        out_shape=jax.ShapeDtypeStruct((lq * n, e), x1_snb.dtype),
        in_specs=[vmem] * 8,
        out_specs=vmem,
    )(x1f, x2f, wq_t, wkv_t, wo_t, bq, bkv, bo)

    # Free reshape back to seq-first (Lq, N, E).
    return out_flat.reshape(lq, n, e)


def make_raw_params(key):
    """Raw params in PyTorch nn.MultiheadAttention(64, 4) convention (y = x @ W.T + b)."""
    k1, k2, k3, k4 = jax.random.split(key, 4)
    bound = 1.0 / math.sqrt(EMBED)
    in_proj_w = jax.random.uniform(k1, (3 * EMBED, EMBED), jnp.float32, -bound, bound)
    out_proj_w = jax.random.uniform(k2, (EMBED, EMBED), jnp.float32, -bound, bound)
    in_proj_b = jax.random.uniform(k3, (3 * EMBED,), jnp.float32, -bound, bound)
    out_proj_b = jax.random.uniform(k4, (EMBED,), jnp.float32, -bound, bound)
    return in_proj_w, in_proj_b, out_proj_w, out_proj_b


def prep_kernel_params(raw):
    """One-time kernel layout prep: scale folding, head-interleaved KV, bf16 weights."""
    in_proj_w, in_proj_b, out_proj_w, out_proj_b = raw
    wq, wk, wv = jnp.split(in_proj_w, 3, axis=0)
    bq, bk, bv = jnp.split(in_proj_b, 3)

    wq_t = (wq.T * SCALE).astype(jnp.bfloat16)                 # (E, E), scale folded in
    bq_s = (bq * SCALE).reshape(1, EMBED).astype(jnp.float32)

    wk_t, wv_t = wk.T, wv.T
    kv_cols, kv_bias = [], []
    for h in range(NUM_HEADS):                                  # [K_h0 | V_h0 | K_h1 | V_h1 | ...]
        lo, hi = h * HEAD_DIM, (h + 1) * HEAD_DIM
        kv_cols += [wk_t[:, lo:hi], wv_t[:, lo:hi]]
        kv_bias += [bk[lo:hi], bv[lo:hi]]
    wkv_t = jnp.concatenate(kv_cols, axis=1).astype(jnp.bfloat16)              # (E, 2E)
    bkv = jnp.concatenate(kv_bias).reshape(1, 2 * EMBED).astype(jnp.float32)   # (1, 2E)

    wo_t = out_proj_w.T.astype(jnp.bfloat16)                    # (E, E)
    bo = out_proj_b.reshape(1, EMBED).astype(jnp.float32)
    return wq_t, wkv_t, wo_t, bq_s, bkv, bo


def mha_reference(x1_snb, x2_snb, raw):
    """Pure-JAX fp32 reference matching nn.MultiheadAttention forward semantics."""
    in_proj_w, in_proj_b, out_proj_w, out_proj_b = raw
    wq, wk, wv = jnp.split(in_proj_w, 3, axis=0)
    bq, bk, bv = jnp.split(in_proj_b, 3)

    q = x1_snb @ wq.T + bq           # (Lq, N, E)
    k = x2_snb @ wk.T + bk           # (Lk, N, E)
    v = x2_snb @ wv.T + bv
    lq, n, e = q.shape
    lk = k.shape[0]

    def split_heads(t, L):
        # (L, N, E) -> (N, H, L, Dh)
        return t.reshape(L, n, NUM_HEADS, HEAD_DIM).transpose(1, 2, 0, 3)

    qh, kh, vh = split_heads(q, lq), split_heads(k, lk), split_heads(v, lk)
    s = jnp.einsum("nhqd,nhkd->nhqk", qh * SCALE, kh)
    p = jax.nn.softmax(s, axis=-1)
    ctx = jnp.einsum("nhqk,nhkd->nhqd", p, vh)              # (N, H, Lq, Dh)
    ctx = ctx.transpose(2, 0, 1, 3).reshape(lq, n, e)        # (Lq, N, E)
    return ctx @ out_proj_w.T + out_proj_b


if __name__ == "__main__":
    key = jax.random.PRNGKey(0)
    kx1, kx2, kp = jax.random.split(key, 3)

    Lq, Lk, N = 4, 28, 2
    # seq-first inputs (L, N, E), as nn.MultiheadAttention expects by default.
    x1 = jax.random.normal(kx1, (Lq, N, EMBED), jnp.float32)
    x2 = jax.random.normal(kx2, (Lk, N, EMBED), jnp.float32)

    raw_params = make_raw_params(kp)
    kparams = prep_kernel_params(raw_params)

    out = jax.block_until_ready(mha_forward(x1, x2, kparams))
    ref = mha_reference(x1, x2, raw_params)

    assert out.shape == (Lq, N, EMBED)
    # bf16 MXU operands + approx EUP reciprocal -> slightly looser tolerance vs fp32 reference.
    assert jnp.allclose(out, ref, atol=2e-2, rtol=2e-2), "mismatch vs reference"

    print("KERNEL_OK")
</pallas_src>

<mosaic_0001>
module attributes {stable_mosaic.version = 11 : i64} {
  func.func @_mha_kernel(%arg0: memref<8x64xf32, #tpu.memory_space<vmem>>, %arg1: memref<56x64xf32, #tpu.memory_space<vmem>>, %arg2: memref<64x64xbf16, #tpu.memory_space<vmem>>, %arg3: memref<64x128xbf16, #tpu.memory_space<vmem>>, %arg4: memref<64x64xbf16, #tpu.memory_space<vmem>>, %arg5: memref<1x64xf32, #tpu.memory_space<vmem>>, %arg6: memref<1x128xf32, #tpu.memory_space<vmem>>, %arg7: memref<1x64xf32, #tpu.memory_space<vmem>>, %arg8: memref<8x64xf32, #tpu.memory_space<vmem>>) attributes {dimension_semantics = [], scalar_prefetch = 0 : i64, scratch_operands = 0 : i64, tpu.core_type = #tpu.core_type<tc>} {
    %c0 = arith.constant 0 : index
    %c0_0 = arith.constant 0 : index
    %0 = vector.load %arg0[%c0, %c0_0] : memref<8x64xf32, #tpu.memory_space<vmem>>, vector<8x64xf32>
    %1 = arith.truncf %0 : vector<8x64xf32> to vector<8x64xbf16>
    %c0_1 = arith.constant 0 : index
    %c0_2 = arith.constant 0 : index
    %2 = vector.load %arg1[%c0_1, %c0_2] : memref<56x64xf32, #tpu.memory_space<vmem>>, vector<56x64xf32>
    %3 = arith.truncf %2 : vector<56x64xf32> to vector<56x64xbf16>
    %c0_3 = arith.constant 0 : index
    %c0_4 = arith.constant 0 : index
    %4 = vector.load %arg2[%c0_3, %c0_4] : memref<64x64xbf16, #tpu.memory_space<vmem>>, vector<64x64xbf16>
    %cst = arith.constant dense<0.000000e+00> : vector<8x64xf32>
    %5 = tpu.matmul %1, %4, %cst {dimension_numbers = #tpu.dot_dimension_numbers<[1], [0], [0], [1], [0, 0, 1, 1], [], []>} : vector<8x64xbf16>, vector<64x64xbf16>, vector<8x64xf32> -> vector<8x64xf32>
    %c0_5 = arith.constant 0 : index
    %c0_6 = arith.constant 0 : index
    %6 = vector.load %arg5[%c0_5, %c0_6] : memref<1x64xf32, #tpu.memory_space<vmem>>, vector<1x64xf32>
    %7 = vector.broadcast %6 : vector<1x64xf32> to vector<8x64xf32>
    %8 = arith.addf %5, %7 : vector<8x64xf32>
    %c0_7 = arith.constant 0 : index
    %c0_8 = arith.constant 0 : index
    %9 = vector.load %arg3[%c0_7, %c0_8] : memref<64x128xbf16, #tpu.memory_space<vmem>>, vector<64x128xbf16>
    %cst_9 = arith.constant dense<0.000000e+00> : vector<56x128xf32>
    %10 = tpu.matmul %3, %9, %cst_9 {dimension_numbers = #tpu.dot_dimension_numbers<[1], [0], [0], [1], [0, 0, 1, 1], [], []>} : vector<56x64xbf16>, vector<64x128xbf16>, vector<56x128xf32> -> vector<56x128xf32>
    %c0_10 = arith.constant 0 : index
    %c0_11 = arith.constant 0 : index
    %11 = vector.load %arg6[%c0_10, %c0_11] : memref<1x128xf32, #tpu.memory_space<vmem>>, vector<1x128xf32>
    %12 = vector.broadcast %11 : vector<1x128xf32> to vector<56x128xf32>
    %13 = arith.addf %10, %12 : vector<56x128xf32>
    %14 = arith.truncf %8 : vector<8x64xf32> to vector<8x64xbf16>
    %15 = arith.truncf %13 : vector<56x128xf32> to vector<56x128xbf16>
    %16 = tpu.iota {dimensions = array<i32: 0>} : vector<8x56xi32>
    %17 = tpu.iota {dimensions = array<i32: 1>} : vector<8x56xi32>
    %c1_i32 = arith.constant 1 : i32
    %18 = vector.broadcast %c1_i32 : i32 to vector<8x56xi32>
    %19 = arith.andi %16, %18 : vector<8x56xi32>
    %c1_i32_12 = arith.constant 1 : i32
    %20 = vector.broadcast %c1_i32_12 : i32 to vector<8x56xi32>
    %21 = arith.andi %17, %20 : vector<8x56xi32>
    %22 = arith.cmpi eq, %19, %21 : vector<8x56xi32>
    %cst_13 = arith.constant 0.000000e+00 : f32
    %cst_14 = arith.constant -1.000000e+30 : f32
    %23 = vector.broadcast %cst_13 : f32 to vector<8x56xf32>
    %24 = vector.broadcast %cst_14 : f32 to vector<8x56xf32>
    %25 = arith.select %22, %23, %24 : vector<8x56xi1>, vector<8x56xf32>
    %cst_15 = arith.constant 0.000000e+00 : f32
    %26 = vector.broadcast %cst_15 : f32 to vector<8x64xf32>
    %c0_16 = arith.constant 0 : index
    %c0_17 = arith.constant 0 : index
    %27 = vector.load %arg7[%c0_16, %c0_17] : memref<1x64xf32, #tpu.memory_space<vmem>>, vector<1x64xf32>
    %28 = vector.broadcast %27 : vector<1x64xf32> to vector<8x64xf32>
    %29 = arith.addf %26, %28 : vector<8x64xf32>
    %30 = vector.extract_strided_slice %15 {offsets = [0, 0], sizes = [56, 16], strides = [1, 1]} : vector<56x128xbf16> to vector<56x16xbf16>
    %31 = vector.extract_strided_slice %15 {offsets = [0, 16], sizes = [56, 16], strides = [1, 1]} : vector<56x128xbf16> to vector<56x16xbf16>
    %32 = vector.extract_strided_slice %14 {offsets = [0, 0], sizes = [8, 16], strides = [1, 1]} : vector<8x64xbf16> to vector<8x16xbf16>
    %cst_18 = arith.constant dense<0.000000e+00> : vector<8x56xf32>
    %33 = tpu.matmul %32, %30, %cst_18 {dimension_numbers = #tpu.dot_dimension_numbers<[1], [1], [0], [0], [0, 0, 1, 0], [], []>} : vector<8x16xbf16>, vector<56x16xbf16>, vector<8x56xf32> -> vector<8x56xf32>
    %34 = arith.addf %33, %25 : vector<8x56xf32>
    %cst_19 = arith.constant dense<0xFF800000> : vector<8xf32>
    %35 = vector.multi_reduction <maximumf>, %34, %cst_19 [1] : vector<8x56xf32> to vector<8xf32>
    %36 = vector.shape_cast %35 : vector<8xf32> to vector<8x1xf32>
    %37 = vector.broadcast %36 : vector<8x1xf32> to vector<8x56xf32>
    %38 = arith.subf %34, %37 : vector<8x56xf32>
    %39 = math.exp %38 : vector<8x56xf32>
    %cst_20 = arith.constant dense<0.000000e+00> : vector<8xf32>
    %40 = vector.multi_reduction <add>, %39, %cst_20 [1] : vector<8x56xf32> to vector<8xf32>
    %41 = vector.shape_cast %40 : vector<8xf32> to vector<8x1xf32>
    %42 = tpu.reciprocal %41 {approx = true} : vector<8x1xf32> -> vector<8x1xf32>
    %43 = arith.truncf %39 : vector<8x56xf32> to vector<8x56xbf16>
    %cst_21 = arith.constant dense<0.000000e+00> : vector<8x16xf32>
    %44 = tpu.matmul %43, %31, %cst_21 {dimension_numbers = #tpu.dot_dimension_numbers<[1], [0], [0], [1], [0, 0, 1, 1], [], []>} : vector<8x56xbf16>, vector<56x16xbf16>, vector<8x16xf32> -> vector<8x16xf32>
    %45 = vector.broadcast %42 : vector<8x1xf32> to vector<8x16xf32>
    %46 = arith.mulf %44, %45 : vector<8x16xf32>
    %47 = arith.truncf %46 : vector<8x16xf32> to vector<8x16xbf16>
    %c0_22 = arith.constant 0 : index
    %c0_23 = arith.constant 0 : index
    %48 = vector.load %arg4[%c0_22, %c0_23] : memref<64x64xbf16, #tpu.memory_space<vmem>>, vector<16x64xbf16>
    %cst_24 = arith.constant dense<0.000000e+00> : vector<8x64xf32>
    %49 = tpu.matmul %47, %48, %cst_24 {dimension_numbers = #tpu.dot_dimension_numbers<[1], [0], [0], [1], [0, 0, 1, 1], [], []>} : vector<8x16xbf16>, vector<16x64xbf16>, vector<8x64xf32> -> vector<8x64xf32>
    %50 = arith.addf %29, %49 : vector<8x64xf32>
    %51 = vector.extract_strided_slice %15 {offsets = [0, 32], sizes = [56, 16], strides = [1, 1]} : vector<56x128xbf16> to vector<56x16xbf16>
    %52 = vector.extract_strided_slice %15 {offsets = [0, 48], sizes = [56, 16], strides = [1, 1]} : vector<56x128xbf16> to vector<56x16xbf16>
    %53 = vector.extract_strided_slice %14 {offsets = [0, 16], sizes = [8, 16], strides = [1, 1]} : vector<8x64xbf16> to vector<8x16xbf16>
    %cst_25 = arith.constant dense<0.000000e+00> : vector<8x56xf32>
    %54 = tpu.matmul %53, %51, %cst_25 {dimension_numbers = #tpu.dot_dimension_numbers<[1], [1], [0], [0], [0, 0, 1, 0], [], []>} : vector<8x16xbf16>, vector<56x16xbf16>, vector<8x56xf32> -> vector<8x56xf32>
    %55 = arith.addf %54, %25 : vector<8x56xf32>
    %cst_26 = arith.constant dense<0xFF800000> : vector<8xf32>
    %56 = vector.multi_reduction <maximumf>, %55, %cst_26 [1] : vector<8x56xf32> to vector<8xf32>
    %57 = vector.shape_cast %56 : vector<8xf32> to vector<8x1xf32>
    %58 = vector.broadcast %57 : vector<8x1xf32> to vector<8x56xf32>
    %59 = arith.subf %55, %58 : vector<8x56xf32>
    %60 = math.exp %59 : vector<8x56xf32>
    %cst_27 = arith.constant dense<0.000000e+00> : vector<8xf32>
    %61 = vector.multi_reduction <add>, %60, %cst_27 [1] : vector<8x56xf32> to vector<8xf32>
    %62 = vector.shape_cast %61 : vector<8xf32> to vector<8x1xf32>
    %63 = tpu.reciprocal %62 {approx = true} : vector<8x1xf32> -> vector<8x1xf32>
    %64 = arith.truncf %60 : vector<8x56xf32> to vector<8x56xbf16>
    %cst_28 = arith.constant dense<0.000000e+00> : vector<8x16xf32>
    %65 = tpu.matmul %64, %52, %cst_28 {dimension_numbers = #tpu.dot_dimension_numbers<[1], [0], [0], [1], [0, 0, 1, 1], [], []>} : vector<8x56xbf16>, vector<56x16xbf16>, vector<8x16xf32> -> vector<8x16xf32>
    %66 = vector.broadcast %63 : vector<8x1xf32> to vector<8x16xf32>
    %67 = arith.mulf %65, %66 : vector<8x16xf32>
    %68 = arith.truncf %67 : vector<8x16xf32> to vector<8x16xbf16>
    %c16 = arith.constant 16 : index
    %c0_29 = arith.constant 0 : index
    %69 = vector.load %arg4[%c16, %c0_29] : memref<64x64xbf16, #tpu.memory_space<vmem>>, vector<16x64xbf16>
    %cst_30 = arith.constant dense<0.000000e+00> : vector<8x64xf32>
    %70 = tpu.matmul %68, %69, %cst_30 {dimension_numbers = #tpu.dot_dimension_numbers<[1], [0], [0], [1], [0, 0, 1, 1], [], []>} : vector<8x16xbf16>, vector<16x64xbf16>, vector<8x64xf32> -> vector<8x64xf32>
    %71 = arith.addf %50, %70 : vector<8x64xf32>
    %72 = vector.extract_strided_slice %15 {offsets = [0, 64], sizes = [56, 16], strides = [1, 1]} : vector<56x128xbf16> to vector<56x16xbf16>
    %73 = vector.extract_strided_slice %15 {offsets = [0, 80], sizes = [56, 16], strides = [1, 1]} : vector<56x128xbf16> to vector<56x16xbf16>
    %74 = vector.extract_strided_slice %14 {offsets = [0, 32], sizes = [8, 16], strides = [1, 1]} : vector<8x64xbf16> to vector<8x16xbf16>
    %cst_31 = arith.constant dense<0.000000e+00> : vector<8x56xf32>
    %75 = tpu.matmul %74, %72, %cst_31 {dimension_numbers = #tpu.dot_dimension_numbers<[1], [1], [0], [0], [0, 0, 1, 0], [], []>} : vector<8x16xbf16>, vector<56x16xbf16>, vector<8x56xf32> -> vector<8x56xf32>
    %76 = arith.addf %75, %25 : vector<8x56xf32>
    %cst_32 = arith.constant dense<0xFF800000> : vector<8xf32>
    %77 = vector.multi_reduction <maximumf>, %76, %cst_32 [1] : vector<8x56xf32> to vector<8xf32>
    %78 = vector.shape_cast %77 : vector<8xf32> to vector<8x1xf32>
    %79 = vector.broadcast %78 : vector<8x1xf32> to vector<8x56xf32>
    %80 = arith.subf %76, %79 : vector<8x56xf32>
    %81 = math.exp %80 : vector<8x56xf32>
    %cst_33 = arith.constant dense<0.000000e+00> : vector<8xf32>
    %82 = vector.multi_reduction <add>, %81, %cst_33 [1] : vector<8x56xf32> to vector<8xf32>
    %83 = vector.shape_cast %82 : vector<8xf32> to vector<8x1xf32>
    %84 = tpu.reciprocal %83 {approx = true} : vector<8x1xf32> -> vector<8x1xf32>
    %85 = arith.truncf %81 : vector<8x56xf32> to vector<8x56xbf16>
    %cst_34 = arith.constant dense<0.000000e+00> : vector<8x16xf32>
    %86 = tpu.matmul %85, %73, %cst_34 {dimension_numbers = #tpu.dot_dimension_numbers<[1], [0], [0], [1], [0, 0, 1, 1], [], []>} : vector<8x56xbf16>, vector<56x16xbf16>, vector<8x16xf32> -> vector<8x16xf32>
    %87 = vector.broadcast %84 : vector<8x1xf32> to vector<8x16xf32>
    %88 = arith.mulf %86, %87 : vector<8x16xf32>
    %89 = arith.truncf %88 : vector<8x16xf32> to vector<8x16xbf16>
    %c32 = arith.constant 32 : index
    %c0_35 = arith.constant 0 : index
    %90 = vector.load %arg4[%c32, %c0_35] : memref<64x64xbf16, #tpu.memory_space<vmem>>, vector<16x64xbf16>
    %cst_36 = arith.constant dense<0.000000e+00> : vector<8x64xf32>
    %91 = tpu.matmul %89, %90, %cst_36 {dimension_numbers = #tpu.dot_dimension_numbers<[1], [0], [0], [1], [0, 0, 1, 1], [], []>} : vector<8x16xbf16>, vector<16x64xbf16>, vector<8x64xf32> -> vector<8x64xf32>
    %92 = arith.addf %71, %91 : vector<8x64xf32>
    %93 = vector.extract_strided_slice %15 {offsets = [0, 96], sizes = [56, 16], strides = [1, 1]} : vector<56x128xbf16> to vector<56x16xbf16>
    %94 = vector.extract_strided_slice %15 {offsets = [0, 112], sizes = [56, 16], strides = [1, 1]} : vector<56x128xbf16> to vector<56x16xbf16>
    %95 = vector.extract_strided_slice %14 {offsets = [0, 48], sizes = [8, 16], strides = [1, 1]} : vector<8x64xbf16> to vector<8x16xbf16>
    %cst_37 = arith.constant dense<0.000000e+00> : vector<8x56xf32>
    %96 = tpu.matmul %95, %93, %cst_37 {dimension_numbers = #tpu.dot_dimension_numbers<[1], [1], [0], [0], [0, 0, 1, 0], [], []>} : vector<8x16xbf16>, vector<56x16xbf16>, vector<8x56xf32> -> vector<8x56xf32>
    %97 = arith.addf %96, %25 : vector<8x56xf32>
    %cst_38 = arith.constant dense<0xFF800000> : vector<8xf32>
    %98 = vector.multi_reduction <maximumf>, %97, %cst_38 [1] : vector<8x56xf32> to vector<8xf32>
    %99 = vector.shape_cast %98 : vector<8xf32> to vector<8x1xf32>
    %100 = vector.broadcast %99 : vector<8x1xf32> to vector<8x56xf32>
    %101 = arith.subf %97, %100 : vector<8x56xf32>
    %102 = math.exp %101 : vector<8x56xf32>
    %cst_39 = arith.constant dense<0.000000e+00> : vector<8xf32>
    %103 = vector.multi_reduction <add>, %102, %cst_39 [1] : vector<8x56xf32> to vector<8xf32>
    %104 = vector.shape_cast %103 : vector<8xf32> to vector<8x1xf32>
    %105 = tpu.reciprocal %104 {approx = true} : vector<8x1xf32> -> vector<8x1xf32>
    %106 = arith.truncf %102 : vector<8x56xf32> to vector<8x56xbf16>
    %cst_40 = arith.constant dense<0.000000e+00> : vector<8x16xf32>
    %107 = tpu.matmul %106, %94, %cst_40 {dimension_numbers = #tpu.dot_dimension_numbers<[1], [0], [0], [1], [0, 0, 1, 1], [], []>} : vector<8x56xbf16>, vector<56x16xbf16>, vector<8x16xf32> -> vector<8x16xf32>
    %108 = vector.broadcast %105 : vector<8x1xf32> to vector<8x16xf32>
    %109 = arith.mulf %107, %108 : vector<8x16xf32>
    %110 = arith.truncf %109 : vector<8x16xf32> to vector<8x16xbf16>
    %c48 = arith.constant 48 : index
    %c0_41 = arith.constant 0 : index
    %111 = vector.load %arg4[%c48, %c0_41] : memref<64x64xbf16, #tpu.memory_space<vmem>>, vector<16x64xbf16>
    %cst_42 = arith.constant dense<0.000000e+00> : vector<8x64xf32>
    %112 = tpu.matmul %110, %111, %cst_42 {dimension_numbers = #tpu.dot_dimension_numbers<[1], [0], [0], [1], [0, 0, 1, 1], [], []>} : vector<8x16xbf16>, vector<16x64xbf16>, vector<8x64xf32> -> vector<8x64xf32>
    %113 = arith.addf %92, %112 : vector<8x64xf32>
    %c0_43 = arith.constant 0 : index
    %c0_44 = arith.constant 0 : index
    %114 = vector.load %arg8[%c0_43, %c0_44] : memref<8x64xf32, #tpu.memory_space<vmem>>, vector<8x64xf32>
    tpu.vector_store %arg8[%c0_43, %c0_44], %113 {strides = array<i32>} : memref<8x64xf32, #tpu.memory_space<vmem>>, vector<8x64xf32>,
    return
  }
}

</mosaic_0001>

<bundles_post_ra>
// kernel: mha_forward.1
= control target key start
LH: loop header
LB: loop body
LE: loop exit
PB: predicated region body
PF: predicated region fallthrough
CT: control target
= control target key end

     0   :  { %13 = vsyncpa [#allocation3], 0  ;;  %s1879_s0 = inlined_call_operand.hbm [shape: f32[8,64], index: 0, kind: input, shape index: {}]   ;;  %s1880_s1 = inlined_call_operand.hbm [shape: f32[56,64], index: 1, kind: input, shape index: {}]   ;;  %s1881_s2 = inlined_call_operand.hbm [shape: bf16[64,64], index: 2, kind: input, shape index: {}]   ;;  %s1882_s3 = inlined_call_operand.hbm [shape: bf16[64,128], index: 3, kind: input, shape index: {}]   ;;  %s1883_s4 = inlined_call_operand.hbm [shape: bf16[64,64], index: 4, kind: input, shape index: {}]   ;;  %s1884_s5 = inlined_call_operand.vmem [shape: f32[1,64], index: 5, kind: input, shape index: {}]   ;;  %s1885_s6 = inlined_call_operand.vmem [shape: f32[1,128], index: 6, kind: input, shape index: {}]   ;;  %s1886_s7 = inlined_call_operand.vmem [shape: f32[1,64], index: 7, kind: input, shape index: {}]   ;;  %s1887_s8 = inlined_call_operand.hbm [shape: f32[8,64], index: 8, kind: output, shape index: {}]  }
   0x1   :  { %14 = vsyncpa [#allocation6], 0 }
   0x2   :  { %15 = vsyncpa [#allocation9], 0 }
   0x3   :  { %16 = vsyncpa [#allocation4], 0  ;;  %s1534_s27 = smov [#allocation5]   ;;  %s1394_s9 = scalar_lea.hbm %s1880_s1, 896 }
   0x4   :  { %s32_s28 = sshll.u32 %s1534_s27, 4  ;;  %p1395_p0 = scmp.ne.s32.totalorder %s1880_s1, %s1394_s9  ;;  %s33_s28 = int_to_ptr.vmem [resolvable:$true] %s32_s28 }
   0x5   :  { %p1398_p1 = scmp.lt.u32.totalorder %s1394_s9, %s1880_s1 }
   0x7   :  { %p1400_p2 = pnand %p1398_p1, %p1395_p0 }
   0x9   :  { %1403 = shalt.err (!%p1400_p2)
}
   0xa   :  { %s1404_s14 = scalar_lea.vmem %s33_s28, 896  ;;  %p1409_p4 = scmp.lt.s32.totalorder %s33_s28, %s33_s28 }
   0xb   :  { %p1405_p3 = scmp.ne.s32.totalorder %s33_s28, %s1404_s14  ;;  %p1410_p5 = scmp.lt.s32.totalorder %s1404_s14, %s1404_s14 }
   0xd   :  { %p1411_p6 = por %p1410_p5, %p1409_p4 }
   0xf   :  { %p1412_p7 = pnand %p1411_p6, %p1405_p3 }
  0x11   :  { %1415 = shalt.err (!%p1412_p7)
}
  0x12   :  { %s1535_s15 = smov 128   ;;  %s1536_s16 = smov 8  }
  0x13   :  { %38 = dma.hbm_to_vmem [thread:$0]  %s1880_s1, 896, %s33_s28, [#allocation6], %s1535_s15, %s1535_s15, %s1536_s16  }
  0x14   :  { %s1537_s19 = smov [#allocation8]   ;;  %s1538_s21 = smov [#allocation2]  }
  0x15   :  { %s56_s20 = sshll.u32 %s1537_s19, 4  ;;  %s23_s22 = sshll.u32 %s1538_s21, 4  ;;  %s57_s20 = int_to_ptr.vmem [resolvable:$true] %s56_s20  ;;  %s24_s22 = int_to_ptr.vmem [resolvable:$true] %s23_s22 }
  0x16   :  { %s1416_s25 = scalar_lea.hbm %s1882_s3, 512 }
  0x17   :  { %p1417_p8 = scmp.ne.s32.totalorder %s1882_s3, %s1416_s25  ;;  %p1420_p9 = scmp.lt.u32.totalorder %s1416_s25, %s1882_s3 }
  0x19   :  { %p1422_p10 = pnand %p1420_p9, %p1417_p8 }
  0x1b   :  { %1425 = shalt.err (!%p1422_p10)
}
  0x1c   :  { %s1426_s1 = scalar_lea.vmem %s57_s20, 512  ;;  %p1431_p12 = scmp.lt.s32.totalorder %s57_s20, %s57_s20 }
  0x1d   :  { %p1427_p11 = scmp.ne.s32.totalorder %s57_s20, %s1426_s1  ;;  %p1432_p13 = scmp.lt.s32.totalorder %s1426_s1, %s1426_s1 }
  0x1f   :  { %p1433_p0 = por %p1432_p13, %p1431_p12 }
  0x21   :  { %p1434_p1 = pnand %p1433_p0, %p1427_p11 }
  0x23   :  { %1437 = shalt.err (!%p1434_p1)
}
  0x24   :  { %s1539_s28 = smov 64   ;;  %s1540_s9 = smov 4  }
  0x25   :  { %62 = dma.hbm_to_vmem [thread:$0]  %s1882_s3, 512, %s57_s20, [#allocation9], %s1539_s28, %s1539_s28, %s1540_s9  }
  0x26   :  { %s1438_s14 = scalar_lea.hbm %s1879_s0, 128 }
  0x27   :  { %p1439_p2 = scmp.ne.s32.totalorder %s1879_s0, %s1438_s14  ;;  %p1442_p3 = scmp.lt.u32.totalorder %s1438_s14, %s1879_s0 }
  0x29   :  { %p1444_p4 = pnand %p1442_p3, %p1439_p2 }
  0x2b   :  { %1447 = shalt.err (!%p1444_p4)
}
  0x2c   :  { %s1448_s19 = scalar_lea.vmem %s24_s22, 128  ;;  %p1453_p6 = scmp.lt.s32.totalorder %s24_s22, %s24_s22 }
  0x2d   :  { %p1449_p5 = scmp.ne.s32.totalorder %s24_s22, %s1448_s19  ;;  %p1454_p7 = scmp.lt.s32.totalorder %s1448_s19, %s1448_s19 }
  0x2f   :  { %p1455_p8 = por %p1454_p7, %p1453_p6 }
  0x31   :  { %p1456_p9 = pnand %p1455_p8, %p1449_p5 }
  0x33   :  { %1459 = shalt.err (!%p1456_p9)
}
  0x34   :  { %26 = dma.hbm_to_vmem [thread:$0]  %s1879_s0, 128, %s24_s22, [#allocation3]  }
  0x35   :  { %s1541_s21 = smov [#allocation7]   ;;  %s1542_s24 = smov [#allocation10]  }
  0x36   :  { %s44_s23 = sshll.u32 %s1541_s21, 4  ;;  %s68_s25 = sshll.u32 %s1542_s24, 4  ;;  %s45_s23 = int_to_ptr.vmem [resolvable:$true] %s44_s23  ;;  %s69_s25 = int_to_ptr.vmem [resolvable:$true] %s68_s25 }
  0x37   :  { %s1460_s29 = scalar_lea.hbm %s1881_s2, 512 }
  0x38   :  { %p1461_p10 = scmp.ne.s32.totalorder %s1881_s2, %s1460_s29  ;;  %p1464_p11 = scmp.lt.u32.totalorder %s1460_s29, %s1881_s2 }
  0x3a   :  { %p1466_p12 = pnand %p1464_p11, %p1461_p10 }
  0x3c   :  { %1469 = shalt.err (!%p1466_p12)
}
  0x3d   :  { %s1470_s0 = scalar_lea.vmem %s45_s23, 512  ;;  %p1475_p0 = scmp.lt.s32.totalorder %s45_s23, %s45_s23 }
  0x3e   :  { %p1471_p13 = scmp.ne.s32.totalorder %s45_s23, %s1470_s0  ;;  %p1476_p1 = scmp.lt.s32.totalorder %s1470_s0, %s1470_s0 }
  0x40   :  { %p1477_p2 = por %p1476_p1, %p1475_p0 }
  0x42   :  { %p1478_p3 = pnand %p1477_p2, %p1471_p13 }
  0x44   :  { %1481 = shalt.err (!%p1478_p3)
}
  0x45   :  { %50 = dma.hbm_to_vmem [thread:$0]  %s1881_s2, 512, %s45_s23, [#allocation6], %s1539_s28, %s1539_s28, %s1540_s9  }
  0x46   :  { %s1482_s15 = scalar_lea.hbm %s1883_s4, 512 }
  0x47   :  { %p1483_p4 = scmp.ne.s32.totalorder %s1883_s4, %s1482_s15  ;;  %p1486_p5 = scmp.lt.u32.totalorder %s1482_s15, %s1883_s4 }
  0x49   :  { %p1488_p6 = pnand %p1486_p5, %p1483_p4 }
  0x4b   :  { %1491 = shalt.err (!%p1488_p6)
}
  0x4c   :  { %s1492_s3 = scalar_lea.vmem %s69_s25, 512  ;;  %p1497_p8 = scmp.lt.s32.totalorder %s69_s25, %s69_s25 }
  0x4d   :  { %p1493_p7 = scmp.ne.s32.totalorder %s69_s25, %s1492_s3  ;;  %p1498_p9 = scmp.lt.s32.totalorder %s1492_s3, %s1492_s3 }
  0x4f   :  { %p1499_p10 = por %p1498_p9, %p1497_p8 }
  0x51   :  { %p1500_p11 = pnand %p1499_p10, %p1493_p7 }
  0x53   :  { %1503 = shalt.err (!%p1500_p11)
}
  0x54   :  { %74 = dma.hbm_to_vmem [thread:$0]  %s1883_s4, 512, %s69_s25, [#allocation9], %s1539_s28, %s1539_s28, %s1540_s9  }
  0x55   :  { %1526 = dma.done.wait [#allocation3], 128  }
  0x56   :  { %1527 = vsyncadd [#allocation3], 4294967168 }
  0x57   :  { %1528 = dma.done.wait [#allocation6], 1408  }
  0x58   :  { %1529 = vsyncadd [#allocation6], 4294965888 }
  0x59   :  { %1530 = dma.done.wait [#allocation9], 1024  }
  0x5a   :  { %1531 = vsyncadd [#allocation9], 4294966272  ;;  %v1543_v0 = vmov 0.0   ;;  %vm1544_vm0 = vmmov 0   ;;  %v1366_v1 = vld [vmem:[#allocation8] sm:$0xff]   ;;  %v1367_v2 = vld [vmem:[#allocation8 + $0x8] sm:$0xff]   ;;  %v313_v53 = vlaneseq }
  0x5b   :  { %1186 = vmatprep.subr.bf16.mxu0 %v1543_v0  ;;  %1194 = vmatprep.mubr.msk.bf16.mxu0 %vm1544_vm0, %v1543_v0  ;;  %v1368_v3 = vld [vmem:[#allocation8 + $0x10] sm:$0xff]   ;;  %v99_v4 = vld [vmem:[#allocation5] sm:$0xff]  ;;  %vm149_vm1 = vcmask 523264   ;;  %v1370_v7 = vld [vmem:[#allocation7] sm:$0xff]   ;;  %vm329_vm2 = vcmask 130048   ;;  %s1545_s21 = smov 112  }
  0x5c   :  { %1198 = vmatprep.subr.bf16.mxu1 %v1366_v1  ;;  %v100_v5 = vld [vmem:[#allocation5 + $0x8] sm:$0xff]  ;;  %v1369_v8 = vld [vmem:[#allocation8 + $0x18] sm:$0xff]   ;;  %v102_v10 = vld [vmem:[#allocation5 + $0x18] sm:$0xff]  ;;  %1187 = vmatpush3.bf16.msra.mxu0 %v1370_v7  ;;  %v314_v54 = vshrl.u32 %v313_v53, 7  ;;  %v316_v55 = vand.u32 127, %v313_v53  ;;  %vm385_vm4 = vcmask 457728  }
  0x5d   :  { %1199 = vmatpush3.bf16.msra.mxu1 %v1366_v1  ;;  %v106_v6 = vpack.c.bf16 %v100_v5, %v99_v4  ;;  %v101_v9 = vld [vmem:[#allocation5 + $0x10] sm:$0xff]  ;;  %v1371_v11 = vld [vmem:[#allocation7 + $0x8] sm:$0xff]   ;;  %v104_v13 = vld [vmem:[#allocation5 + $0x28] sm:$0xff]  ;;  %1188 = vmatprep.subr.bf16.mxu0 %v1543_v0  ;;  %v1546_v58 = vmov -1e+30   ;;  %vm415_vm5 = vcmask 1043456  }
  0x5e   :  { %1200 = vmatprep.subr.bf16.mxu1 %v1367_v2  ;;  %v103_v12 = vld [vmem:[#allocation5 + $0x20] sm:$0xff]  ;;  %v1372_v14 = vld [vmem:[#allocation7 + $0x10] sm:$0xff]   ;;  %v107_v15 = vpack.c.bf16 %v102_v10, %v101_v9  ;;  %v1373_v17 = vld [vmem:[#allocation7 + $0x18] sm:$0xff]   ;;  %v317_v56 = vand.u32 1, %v314_v54  ;;  %v318_v57 = vand.u32 1, %v316_v55  ;;  %s1548_s24 = smov 80  }
  0x5f   :  { %1206 = vmatprep.mubr.msk.bf16.mxu1 %vm149_vm1, %v106_v6  ;;  %v108_v16 = vpack.c.bf16 %v104_v13, %v103_v12  ;;  %v97_v18 = vld [vmem:[#allocation2] sm:$0xff]  ;;  %v105_v19 = vld [vmem:[#allocation5 + $0x30] sm:$0xff]  ;;  %s1549_s25 = smov 32   ;;  %s1550_s26 = smov 48  }
  0x60   :  { %1189 = vmatpush3.bf16.msra.mxu0 %v1371_v11  ;;  %v98_v20 = vpack.c.bf16 %v97_v18, %v97_v18  ;;  %v109_v21 = vpack.c.bf16 %v105_v19, %v105_v19  ;;  %v1099_v23 = vld [vmem:[%s1885_s6] ss:$0 sm:$0xff]  ;;  %vm319_vm3 = vcmp.eq.s32.totalorder %v317_v56, %v318_v57  ;;  %s1552_s30 = smov [#allocation11]  }
  0x61   :  { %1201 = vmatpush3.bf16.msra.mxu1 %v1367_v2  ;;  %1190 = vmatprep.subr.bf16.mxu0 %v1543_v0  ;;  %v1093_v49 = vld [vmem:[%s1884_s5] ss:$0 sm:$0xff]  ;;  %v1722_v59 = vsel %vm319_vm3, 0.0, %v1546_v58  ;;  %s1547_s5 = smov 96   ;;  %s1082_s1 = sshll.u32 %s1552_s30, 4  ;;  %s1083_s1 = int_to_ptr.vmem [resolvable:$true] %s1082_s1 }
  0x62   :  { %1202 = vmatprep.subr.bf16.mxu1 %v1368_v3  ;;  %s1504_s10 = scalar_lea.vmem %s1083_s1, 128  ;;  %p1509_p13 = scmp.lt.s32.totalorder %s1083_s1, %s1083_s1 }
  0x63   :  { %p1505_p12 = scmp.ne.s32.totalorder %s1083_s1, %s1504_s10  ;;  %p1510_p0 = scmp.lt.s32.totalorder %s1504_s10, %s1504_s10 }
  0x64   :  { %1191 = vmatpush3.bf16.msra.mxu0 %v1372_v14  ;;  %v1374_v14 = vld [vmem:[#allocation10] sm:$0xff]  }
  0x65   :  { %1203 = vmatpush3.bf16.msra.mxu1 %v1368_v3  ;;  %1192 = vmatprep.subr.bf16.mxu0 %v1543_v0  ;;  %p1511_p1 = por %p1510_p0, %p1509_p13 }
  0x66   :  { %1204 = vmatprep.subr.bf16.mxu1 %v1369_v8 }
  0x67   :  { %p1512_p2 = pnand %p1511_p1, %p1505_p12 }
  0x68   :  { %1193 = vmatpush3.bf16.msra.mxu0 %v1373_v17 }
  0x69   :  { %1205 = vmatpush3.bf16.msra.mxu1 %v1369_v8  ;;  %1214 = vmatprep.subr.bf16.mxu0 %v1543_v0 }
  0x6a   :  { %1226 = vmatprep.subr.bf16.mxu1 %v1543_v0 }
  0x6b   :  { %1195 = vmatmul.mubr.msk.bf16.vlgmr.msra.gmra.mrb[0].mxu0 %vm149_vm1, %v98_v20 }
  0x6c   :  { %1207 = vmatmul.mubr.msk.bf16.vlgmr.msra.gmra.mrb[0].mxu1 %vm149_vm1, %v107_v15  ;;  %1222 = vmatprep.mubr.msk.bf16.mxu0 %vm1544_vm0, %v1543_v0 }
  0x6d   :  { %1210 = vmatprep.mubr.msk.bf16.mxu1 %vm149_vm1, %v108_v16 }
  0x74   :  { %1211 = vmatmul.mubr.msk.bf16.gmra.mrb[4].mxu1 %vm149_vm1, %v109_v21 }
  0x75   :  { %1234 = vmatprep.mubr.msk.bf16.mxu1 %vm1544_vm0, %v1543_v0 }
 0x13e   :  { %v187_v33 = vpop.f32.mrb[0].mxu0 }
 0x13f   :  { %v1208_v22 = vpop.f32.mrb[0].mxu1  ;;  %v1196_v34 = vpop.f32.mrb[1].mxu0  ;;  %v188_v50 = vadd.f32 %v1093_v49, %v187_v33 }
 0x140   :  { %v278_v24 = vpop.f32.mrb[1].mxu1  ;;  %v287_v26 = vadd.f32 %v1208_v22, %v1099_v23  ;;  %v190_v37 = vpop.f32.mrb[2].mxu0 }
 0x141   :  { %v1209_v25 = vpop.f32.mrb[2].mxu1  ;;  %v279_v29 = vadd.f32 %v1099_v23, %v278_v24  ;;  %v1197_v39 = vpop.f32.mrb[3].mxu0  ;;  %v1716_v52 = vpack.c.bf16 %v188_v50, %v188_v50 }
 0x142   :  { %v290_v27 = vadd.f32 %v1209_v25, %v1099_v23  ;;  %v281_v28 = vpop.f32.mrb[3].mxu1 }
 0x143   :  { %v282_v30 = vadd.f32 %v1099_v23, %v281_v28 }
 0x144   :  { %v1687_v31 = vpack.c.bf16 %v290_v27, %v287_v26 }
 0x145   :  { %v1689_v32 = vpack.c.bf16 %v282_v30, %v279_v29 }
 0x146   :  { %403 = vrot.lane.b32.xlu1 %v1687_v31, %s1545_s21  ;;  %v337_v47 = vsel %vm329_vm2, %v1687_v31, 0 }
 0x147   :  { %v1212_v35 = vpop.f32.mrb[4].mxu1  ;;  %v334_v36 = vsel %vm329_vm2, %v1689_v32, 0 }
 0x148   :  { %1215 = vmatpush3.bf16.xpose.msra.mxu0 %v334_v36  ;;  %v294_v38 = vpop.f32.mrb[5].mxu1  ;;  %v303_v43 = vadd.f32 %v1212_v35, %v1099_v23 }
 0x149   :  { %v295_v40 = vadd.f32 %v1099_v23, %v294_v38  ;;  %v1213_v41 = vpop.f32.mrb[6].mxu1  ;;  %1216 = vmatprep.subr.bf16.mxu0 %v1543_v0 }
 0x14a   :  { %v297_v42 = vpop.f32.mrb[7].mxu1  ;;  %v1698_v46 = vpack.c.bf16 %v303_v43, %v303_v43 }
 0x14b   :  { %v298_v44 = vadd.f32 %v1099_v23, %v297_v42 }
 0x14c   :  { %v343_v51 = vsel %vm329_vm2, %v1698_v46, 0 }
 0x14d   :  { %v1696_v45 = vpack.c.bf16 %v298_v44, %v295_v40 }
 0x14f   :  { %405 = vrot.lane.b32.xlu1 %v1696_v45, %s1545_s21  ;;  %v340_v48 = vsel %vm329_vm2, %v1696_v45, 0 }
 0x150   :  { %1217 = vmatpush3.bf16.xpose.msra.mxu0 %v337_v47 }
 0x151   :  { %1218 = vmatprep.subr.bf16.mxu0 %v1543_v0 }
 0x153   :  { %407 = vrot.lane.b32.xlu1 %v1698_v46, %s1545_s21 }
 0x158   :  { %1219 = vmatpush3.bf16.xpose.msra.mxu0 %v340_v48 }
 0x159   :  { %1220 = vmatprep.subr.bf16.mxu0 %v1543_v0 }
 0x160   :  { %1221 = vmatpush3.bf16.xpose.msra.mxu0 %v343_v51 }
 0x161   :  { %1256 = vmatprep.subr.bf16.mxu0 %v1543_v0 }
 0x167   :  { %1223 = vmatmul.mubr.msk.bf16.vlgmr.msra.gmra.mrb[4].mxu0 %vm329_vm2, %v1716_v52 }
 0x168   :  { %1264 = vmatprep.mubr.msk.bf16.mxu0 %vm1544_vm0, %v1543_v0 }
 0x1b8   :  { %v404_v5 = vpop.permute.xlu1 %403 }
 0x1c1   :  { %v406_v8 = vpop.permute.xlu1 %405 }
 0x1c5   :  { %v408_v9 = vpop.permute.xlu1 %407 }
 0x1c6   :  { %v417_v11 = vsel %vm415_vm5, %v408_v9, 0  ;;  %v1375_v9 = vld [vmem:[#allocation10 + $0x8] sm:$0xff]  }
 0x23a   :  { %v379_v60 = vpop.f32.mrb[4].mxu0 }
 0x23b   :  { %v380_v61 = vadd.f32 %v379_v60, %v1722_v59  ;;  %v1224_v62 = vpop.f32.mrb[5].mxu0 }
 0x23c   :  { %v382_v63 = vpop.f32.mrb[6].mxu0 }
 0x23d   :  { %v1225_v1 = vpop.f32.mrb[7].mxu0  ;;  %v386_v2 = vsel %vm385_vm4, %v380_v61, -inf }
 0x23e   :  { %387 = vmax.xlane.f32.xlu0 %v386_v2 }
 0x254   :  { %401 = vrot.lane.b32.xlu0 %v1689_v32, %s1545_s21 }
 0x258   :  { %516 = vrot.lane.b32.xlu0 %v1689_v32, %s1547_s5 }
 0x25c   :  { %518 = vrot.lane.b32.xlu0 %v1687_v31, %s1547_s5 }
 0x260   :  { %520 = vrot.lane.b32.xlu0 %v1696_v45, %s1547_s5 }
 0x264   :  { %522 = vrot.lane.b32.xlu0 %v1698_v46, %s1547_s5 }
 0x268   :  { %514 = vrot.lane.b32.xlu0 %v1716_v52, %s1545_s21 }
 0x2cb   :  { %v388_v3 = vpop.xlane.xlu0 %387 }
 0x2cc   :  { %v389_v4 = vsub.f32 %v380_v61, %v388_v3 }
 0x2ce   :  { %v390_v6 = vmul.f32 1.442695, %v389_v4 }
 0x2cf   :  { %v402_v7 = vpop.permute.xlu0 %401 }
 0x2d0   :  { %1378 = vpow2.f32 %v390_v6  ;;  %1227 = vmatpush3.bf16.msra.mxu1 %v402_v7 }
 0x2d1   :  { %1228 = vmatprep.subr.bf16.mxu1 %v1543_v0 }
 0x2d3   :  { %v517_v25 = vpop.permute.xlu0 %516 }
 0x2d4   :  { %1229 = vmatpush3.bf16.msra.mxu1 %v404_v5  ;;  %v528_v29 = vsel %vm329_vm2, %v517_v25, 0 }
 0x2d5   :  { %1230 = vmatprep.subr.bf16.mxu1 %v1543_v0 }
 0x2d7   :  { %v519_v30 = vpop.permute.xlu0 %518 }
 0x2d8   :  { %1231 = vmatpush3.bf16.msra.mxu1 %v406_v8  ;;  %v531_v33 = vsel %vm329_vm2, %v519_v30, 0 }
 0x2d9   :  { %1232 = vmatprep.subr.bf16.mxu1 %v1543_v0 }
 0x2da   :  { %v1379_v10 = vpop.eup %1378 }
 0x2db   :  { %v392_v12 = vsel %vm385_vm4, %v1379_v10, 0.0  ;;  %v396_v13 = vpack.c.bf16 %v1379_v10, %v1379_v10  ;;  %v521_v34 = vpop.permute.xlu0 %520 }
 0x2dc   :  { %393 = vadd.xlane.f32.xlu1 %v392_v12  ;;  %1233 = vmatpush3.bf16.msra.mxu1 %v417_v11  ;;  %v534_v35 = vsel %vm329_vm2, %v521_v34, 0 }
 0x2dd   :  { %1238 = vmatprep.subr.bf16.mxu1 %v1543_v0 }
 0x2df   :  { %1235 = vmatmul.mubr.msk.bf16.vlgmr.msra.gmra.mrb[8].mxu1 %vm385_vm4, %v396_v13  ;;  %v523_v36 = vpop.permute.xlu0 %522 }
 0x2e0   :  { %1240 = vmatprep.mubr.msk.bf16.mxu1 %vm1544_vm0, %v1543_v0  ;;  %1239 = vmatpush3.bf16.msra.mxu1 %v1374_v14  ;;  %v537_v37 = vsel %vm329_vm2, %v523_v36, 0 }
 0x2e1   :  { %1244 = vmatprep.subr.bf16.mxu1 %v1543_v0 }
 0x2e3   :  { %v515_v38 = vpop.permute.xlu0 %514 }
 0x2ed   :  { %590 = vrot.lane.b32.xlu1 %v1689_v32, %s1548_s24 }
 0x2f1   :  { %592 = vrot.lane.b32.xlu1 %v1687_v31, %s1548_s24 }
 0x2f5   :  { %594 = vrot.lane.b32.xlu1 %v1696_v45, %s1548_s24 }
 0x2f9   :  { %596 = vrot.lane.b32.xlu1 %v1698_v46, %s1548_s24 }
 0x2fd   :  { %705 = vrot.lane.b32.xlu1 %v1687_v31, %s1539_s28 }
 0x301   :  { %707 = vrot.lane.b32.xlu1 %v1696_v45, %s1539_s28 }
 0x305   :  { %709 = vrot.lane.b32.xlu1 %v1698_v46, %s1539_s28 }
 0x309   :  { %701 = vrot.lane.b32.xlu1 %v1716_v52, %s1547_s5 }
 0x30d   :  { %890 = vrot.lane.b32.xlu1 %v1689_v32, %s1549_s25 }
 0x311   :  { %892 = vrot.lane.b32.xlu1 %v1687_v31, %s1549_s25 }
 0x315   :  { %896 = vrot.lane.b32.xlu1 %v1698_v46, %s1549_s25 }
 0x369   :  { %v394_v15 = vpop.xlane.xlu1 %393 }
 0x36a   :  { %1380 = vrcp.f32 %v394_v15 }
 0x36d   :  { %v591_v16 = vpop.permute.xlu1 %590 }
 0x36e   :  { %1257 = vmatpush3.bf16.msra.mxu0 %v591_v16 }
 0x36f   :  { %1258 = vmatprep.subr.bf16.mxu0 %v1543_v0 }
 0x371   :  { %v593_v17 = vpop.permute.xlu1 %592 }
 0x372   :  { %1259 = vmatpush3.bf16.msra.mxu0 %v593_v17 }
 0x373   :  { %1260 = vmatprep.subr.bf16.mxu0 %v1543_v0 }
 0x374   :  { %v1381_v21 = vpop.eup %1380 }
 0x375   :  { %v595_v18 = vpop.permute.xlu1 %594 }
 0x376   :  { %1261 = vmatpush3.bf16.msra.mxu0 %v595_v18 }
 0x377   :  { %1262 = vmatprep.subr.bf16.mxu0 %v1543_v0 }
 0x379   :  { %v597_v19 = vpop.permute.xlu1 %596 }
 0x37a   :  { %v605_v20 = vsel %vm415_vm5, %v597_v19, 0 }
 0x37b   :  { %1263 = vmatpush3.bf16.msra.mxu0 %v605_v20 }
 0x37c   :  { %1274 = vmatprep.subr.bf16.mxu0 %v1543_v0 }
 0x3b2   :  { %v453_v22 = vpop.f32.mrb[8].mxu1 }
 0x3b3   :  { %v459_v23 = vmul.f32 %v1381_v21, %v453_v22  ;;  %v1236_v24 = vpop.f32.mrb[9].mxu1 }
 0x3b4   :  { %v456_v26 = vpop.f32.mrb[10].mxu1 }
 0x3b5   :  { %v460_v27 = vpack.c.bf16 %v459_v23, %v459_v23  ;;  %v1237_v28 = vpop.f32.mrb[11].mxu1 }
 0x3b7   :  { %1241 = vmatmul.mubr.msk.bf16.vlgmr.msra.gmra.mrb[12].mxu1 %vm329_vm2, %v460_v27 }
 0x3b8   :  { %1245 = vmatpush3.bf16.xpose.msra.mxu1 %v528_v29  ;;  %1252 = vmatprep.mubr.msk.bf16.mxu1 %vm1544_vm0, %v1543_v0 }
 0x3b9   :  { %1246 = vmatprep.subr.bf16.mxu1 %v1543_v0 }
 0x3c0   :  { %1247 = vmatpush3.bf16.xpose.msra.mxu1 %v531_v33 }
 0x3c1   :  { %1248 = vmatprep.subr.bf16.mxu1 %v1543_v0 }
 0x3c8   :  { %1249 = vmatpush3.bf16.xpose.msra.mxu1 %v534_v35 }
 0x3c9   :  { %1250 = vmatprep.subr.bf16.mxu1 %v1543_v0 }
 0x3d0   :  { %1251 = vmatpush3.bf16.xpose.msra.mxu1 %v537_v37 }
 0x3d1   :  { %1268 = vmatprep.subr.bf16.mxu1 %v1543_v0 }
 0x3d7   :  { %1253 = vmatmul.mubr.msk.bf16.vlgmr.msra.gmra.mrb[16].mxu1 %vm329_vm2, %v515_v38 }
 0x3d8   :  { %1270 = vmatprep.mubr.msk.bf16.mxu1 %vm1544_vm0, %v1543_v0  ;;  %1269 = vmatpush3.bf16.msra.mxu1 %v1375_v9 }
 0x3d9   :  { %1286 = vmatprep.subr.bf16.mxu1 %v1543_v0 }
 0x4aa   :  { %v573_v39 = vpop.f32.mrb[16].mxu1 }
 0x4ab   :  { %v574_v40 = vadd.f32 %v573_v39, %v1722_v59  ;;  %v1254_v41 = vpop.f32.mrb[17].mxu1 }
 0x4ac   :  { %v576_v42 = vpop.f32.mrb[18].mxu1 }
 0x4ad   :  { %v1255_v43 = vpop.f32.mrb[19].mxu1  ;;  %v579_v44 = vsel %vm385_vm4, %v574_v40, -inf }
 0x4ae   :  { %580 = vmax.xlane.f32.xlu0 %v579_v44 }
 0x4c4   :  { %703 = vrot.lane.b32.xlu0 %v1689_v32, %s1539_s28  ;;  %s1551_s28 = smov 16  }
 0x4c8   :  { %894 = vrot.lane.b32.xlu0 %v1696_v45, %s1549_s25 }
 0x4cc   :  { %888 = vrot.lane.b32.xlu0 %v1716_v52, %s1548_s24  ;;  %v706_v52 = vpop.permute.xlu1 %705 }
 0x4cd   :  { %v718_v56 = vsel %vm329_vm2, %v706_v52, 0 }
 0x4d0   :  { %777 = vrot.lane.b32.xlu0 %v1689_v32, %s1550_s26  ;;  %v708_v57 = vpop.permute.xlu1 %707 }
 0x4d1   :  { %v721_v58 = vsel %vm329_vm2, %v708_v57, 0 }
 0x4d4   :  { %v710_v60 = vpop.permute.xlu1 %709 }
 0x4d5   :  { %v724_v62 = vsel %vm329_vm2, %v710_v60, 0  ;;  %v1377_v60 = vld [vmem:[#allocation10 + $0x18] sm:$0xff]  }
 0x4d8   :  { %v702_v61 = vpop.permute.xlu1 %701 }
 0x4dc   :  { %v891_v63 = vpop.permute.xlu1 %890 }
 0x4dd   :  { %v902_v1 = vsel %vm329_vm2, %v891_v63, 0 }
 0x4e0   :  { %v893_v2 = vpop.permute.xlu1 %892 }
 0x4e1   :  { %v905_v3 = vsel %vm329_vm2, %v893_v2, 0 }
 0x4e4   :  { %v897_v6 = vpop.permute.xlu1 %896 }
 0x4e5   :  { %v911_v7 = vsel %vm329_vm2, %v897_v6, 0 }
 0x53b   :  { %v581_v47 = vpop.xlane.xlu0 %580 }
 0x53c   :  { %v582_v48 = vsub.f32 %v574_v40, %v581_v47 }
 0x53e   :  { %v583_v49 = vmul.f32 1.442695, %v582_v48  ;;  %v1376_v48 = vld [vmem:[#allocation10 + $0x10] sm:$0xff]  }
 0x53f   :  { %v704_v51 = vpop.permute.xlu0 %703 }
 0x540   :  { %1382 = vpow2.f32 %v583_v49  ;;  %v715_v55 = vsel %vm329_vm2, %v704_v51, 0 }
 0x543   :  { %v895_v4 = vpop.permute.xlu0 %894 }
 0x544   :  { %v908_v5 = vsel %vm329_vm2, %v895_v4, 0 }
 0x547   :  { %v889_v8 = vpop.permute.xlu0 %888 }
 0x54a   :  { %v1383_v50 = vpop.eup %1382 }
 0x54b   :  { %v585_v53 = vsel %vm385_vm4, %v1383_v50, 0.0  ;;  %v589_v54 = vpack.c.bf16 %v1383_v50, %v1383_v50  ;;  %v778_v18 = vpop.permute.xlu0 %777 }
 0x54c   :  { %586 = vadd.xlane.f32.xlu1 %v585_v53 }
 0x54d   :  { %1265 = vmatmul.mubr.msk.bf16.vlgmr.msra.gmra.mrb[8].mxu0 %vm385_vm4, %v589_v54 }
 0x54e   :  { %1275 = vmatpush3.bf16.xpose.msra.mxu0 %v715_v55  ;;  %1282 = vmatprep.mubr.msk.bf16.mxu0 %vm1544_vm0, %v1543_v0 }
 0x54f   :  { %1276 = vmatprep.subr.bf16.mxu0 %v1543_v0 }
 0x556   :  { %1277 = vmatpush3.bf16.xpose.msra.mxu0 %v718_v56 }
 0x557   :  { %1278 = vmatprep.subr.bf16.mxu0 %v1543_v0 }
 0x55d   :  { %779 = vrot.lane.b32.xlu1 %v1687_v31, %s1550_s26 }
 0x55e   :  { %1279 = vmatpush3.bf16.xpose.msra.mxu0 %v721_v58 }
 0x55f   :  { %1280 = vmatprep.subr.bf16.mxu0 %v1543_v0 }
 0x561   :  { %781 = vrot.lane.b32.xlu1 %v1696_v45, %s1550_s26 }
 0x566   :  { %1281 = vmatpush3.bf16.xpose.msra.mxu0 %v724_v62 }
 0x567   :  { %1304 = vmatprep.subr.bf16.mxu0 %v1543_v0 }
 0x56d   :  { %1283 = vmatmul.mubr.msk.bf16.vlgmr.msra.gmra.mrb[12].mxu0 %vm329_vm2, %v702_v61 }
 0x56e   :  { %1305 = vmatpush3.bf16.xpose.msra.mxu0 %v902_v1  ;;  %1312 = vmatprep.mubr.msk.bf16.mxu0 %vm1544_vm0, %v1543_v0 }
 0x56f   :  { %1306 = vmatprep.subr.bf16.mxu0 %v1543_v0 }
 0x576   :  { %1307 = vmatpush3.bf16.xpose.msra.mxu0 %v905_v3 }
 0x577   :  { %1308 = vmatprep.subr.bf16.mxu0 %v1543_v0 }
 0x57e   :  { %1309 = vmatpush3.bf16.xpose.msra.mxu0 %v908_v5 }
 0x57f   :  { %1310 = vmatprep.subr.bf16.mxu0 %v1543_v0 }
 0x586   :  { %1311 = vmatpush3.bf16.xpose.msra.mxu0 %v911_v7  ;;  %v1108_v7 = vld [vmem:[%s1886_s7] ss:$0 sm:$0xff] }
 0x58d   :  { %1313 = vmatmul.mubr.msk.bf16.vlgmr.msra.gmra.mrb[16].mxu0 %vm329_vm2, %v889_v8 }
 0x5d9   :  { %v587_v10 = vpop.xlane.xlu1 %586 }
 0x5da   :  { %1384 = vrcp.f32 %v587_v10 }
 0x5dd   :  { %v780_v19 = vpop.permute.xlu1 %779 }
 0x5e1   :  { %v782_v20 = vpop.permute.xlu1 %781 }
 0x5e4   :  { %v1385_v11 = vpop.eup %1384 }
 0x620   :  { %v641_v12 = vpop.f32.mrb[8].mxu0 }
 0x621   :  { %v647_v13 = vmul.f32 %v1385_v11, %v641_v12  ;;  %v1266_v14 = vpop.f32.mrb[9].mxu0 }
 0x622   :  { %v644_v15 = vpop.f32.mrb[10].mxu0 }
 0x623   :  { %v648_v16 = vpack.c.bf16 %v647_v13, %v647_v13  ;;  %v1267_v17 = vpop.f32.mrb[11].mxu0 }
 0x625   :  { %1271 = vmatmul.mubr.msk.bf16.vlgmr.msra.gmra.mrb[12].mxu1 %vm329_vm2, %v648_v16 }
 0x626   :  { %1287 = vmatpush3.bf16.msra.mxu1 %v778_v18  ;;  %1294 = vmatprep.mubr.msk.bf16.mxu1 %vm1544_vm0, %v1543_v0 }
 0x627   :  { %1288 = vmatprep.subr.bf16.mxu1 %v1543_v0 }
 0x62a   :  { %1289 = vmatpush3.bf16.msra.mxu1 %v780_v19 }
 0x62b   :  { %1290 = vmatprep.subr.bf16.mxu1 %v1543_v0 }
 0x62e   :  { %1291 = vmatpush3.bf16.msra.mxu1 %v782_v20 }
 0x62f   :  { %1292 = vmatprep.subr.bf16.mxu1 %v1543_v0 }
 0x640   :  { %v760_v21 = vpop.f32.mrb[12].mxu0 }
 0x641   :  { %v761_v22 = vadd.f32 %v760_v21, %v1722_v59  ;;  %v1284_v23 = vpop.f32.mrb[13].mxu0 }
 0x642   :  { %v763_v24 = vpop.f32.mrb[14].mxu0 }
 0x643   :  { %v1285_v25 = vpop.f32.mrb[15].mxu0  ;;  %v766_v26 = vsel %vm385_vm4, %v761_v22, -inf }
 0x644   :  { %767 = vmax.xlane.f32.xlu0 %v766_v26 }
 0x65a   :  { %783 = vrot.lane.b32.xlu0 %v1698_v46, %s1550_s26 }
 0x65e   :  { %964 = vrot.lane.b32.xlu0 %v1689_v32, %s1551_s28 }
 0x660   :  { %v947_v27 = vpop.f32.mrb[16].mxu0 }
 0x661   :  { %v1314_v28 = vpop.f32.mrb[17].mxu0  ;;  %v948_v33 = vadd.f32 %v947_v27, %v1722_v59 }
 0x662   :  { %v950_v29 = vpop.f32.mrb[18].mxu0 }
 0x663   :  { %v1315_v30 = vpop.f32.mrb[19].mxu0  ;;  %v953_v34 = vsel %vm385_vm4, %v948_v33, -inf }
 0x67d   :  { %954 = vmax.xlane.f32.xlu0 %v953_v34 }
 0x693   :  { %970 = vrot.lane.b32.xlu0 %v1698_v46, %s1551_s28 }
 0x6d1   :  { %v768_v35 = vpop.xlane.xlu0 %767 }
 0x6d2   :  { %v769_v36 = vsub.f32 %v761_v22, %v768_v35 }
 0x6d4   :  { %v770_v37 = vmul.f32 1.442695, %v769_v36 }
 0x6d5   :  { %v784_v38 = vpop.permute.xlu0 %783 }
 0x6d6   :  { %1386 = vpow2.f32 %v770_v37  ;;  %v792_v39 = vsel %vm415_vm5, %v784_v38, 0 }
 0x6d7   :  { %1293 = vmatpush3.bf16.msra.mxu1 %v792_v39 }
 0x6d8   :  { %1298 = vmatprep.subr.bf16.mxu1 %v1543_v0 }
 0x6d9   :  { %v965_v46 = vpop.permute.xlu0 %964 }
 0x6e0   :  { %v1387_v32 = vpop.eup %1386 }
 0x6e1   :  { %v772_v40 = vsel %vm385_vm4, %v1387_v32, 0.0  ;;  %v776_v41 = vpack.c.bf16 %v1387_v32, %v1387_v32 }
 0x6e2   :  { %773 = vadd.xlane.f32.xlu1 %v772_v40 }
 0x6e3   :  { %1295 = vmatmul.mubr.msk.bf16.vlgmr.msra.gmra.mrb[20].mxu1 %vm385_vm4, %v776_v41 }
 0x6e4   :  { %1300 = vmatprep.mubr.msk.bf16.mxu1 %vm1544_vm0, %v1543_v0  ;;  %1299 = vmatpush3.bf16.msra.mxu1 %v1376_v48 }
 0x6e5   :  { %1316 = vmatprep.subr.bf16.mxu1 %v1543_v0 }
 0x6f3   :  { %966 = vrot.lane.b32.xlu1 %v1687_v31, %s1551_s28 }
 0x6f7   :  { %968 = vrot.lane.b32.xlu1 %v1696_v45, %s1551_s28 }
 0x70a   :  { %v955_v59 = vpop.xlane.xlu0 %954 }
 0x70b   :  { %v956_v42 = vsub.f32 %v948_v33, %v955_v59 }
 0x70d   :  { %v957_v43 = vmul.f32 1.442695, %v956_v42 }
 0x70e   :  { %v971_v57 = vpop.permute.xlu0 %970 }
 0x70f   :  { %1388 = vpow2.f32 %v957_v43  ;;  %v979_v58 = vsel %vm415_vm5, %v971_v57, 0 }
 0x719   :  { %v1389_v44 = vpop.eup %1388 }
 0x71a   :  { %v959_v47 = vsel %vm385_vm4, %v1389_v44, 0.0  ;;  %v963_v61 = vpack.c.bf16 %v1389_v44, %v1389_v44 }
 0x71b   :  { %960 = vadd.xlane.f32.xlu1 %v959_v47 }
 0x76f   :  { %v774_v49 = vpop.xlane.xlu1 %773 }
 0x770   :  { %1390 = vrcp.f32 %v774_v49 }
 0x773   :  { %v967_v52 = vpop.permute.xlu1 %966 }
 0x777   :  { %v969_v56 = vpop.permute.xlu1 %968 }
 0x77a   :  { %v1391_v50 = vpop.eup %1390 }
 0x7a8   :  { %v961_v62 = vpop.xlane.xlu1 %960 }
 0x7a9   :  { %1392 = vrcp.f32 %v961_v62 }
 0x7b3   :  { %v1393_v63 = vpop.eup %1392 }
 0x7b6   :  { %v828_v51 = vpop.f32.mrb[20].mxu1 }
 0x7b7   :  { %v834_v31 = vmul.f32 %v1391_v50, %v828_v51  ;;  %v1296_v53 = vpop.f32.mrb[21].mxu1 }
 0x7b8   :  { %v831_v45 = vpop.f32.mrb[22].mxu1 }
 0x7b9   :  { %v835_v54 = vpack.c.bf16 %v834_v31, %v834_v31  ;;  %v1297_v55 = vpop.f32.mrb[23].mxu1 }
 0x7bb   :  { %1301 = vmatmul.mubr.msk.bf16.vlgmr.msra.gmra.mrb[12].mxu1 %vm329_vm2, %v835_v54 }
 0x7bc   :  { %1317 = vmatpush3.bf16.msra.mxu1 %v965_v46  ;;  %1324 = vmatprep.mubr.msk.bf16.mxu1 %vm1544_vm0, %v1543_v0 }
 0x7bd   :  { %1318 = vmatprep.subr.bf16.mxu1 %v1543_v0 }
 0x7c0   :  { %1319 = vmatpush3.bf16.msra.mxu1 %v967_v52 }
 0x7c1   :  { %1320 = vmatprep.subr.bf16.mxu1 %v1543_v0 }
 0x7c4   :  { %1321 = vmatpush3.bf16.msra.mxu1 %v969_v56 }
 0x7c5   :  { %1322 = vmatprep.subr.bf16.mxu1 %v1543_v0 }
 0x7c8   :  { %1323 = vmatpush3.bf16.msra.mxu1 %v979_v58 }
 0x7c9   :  { %1328 = vmatprep.subr.bf16.mxu1 %v1543_v0 }
 0x7cb   :  { %1325 = vmatmul.mubr.msk.bf16.vlgmr.msra.gmra.mrb[24].mxu1 %vm385_vm4, %v963_v61 }
 0x7cc   :  { %1329 = vmatpush3.bf16.msra.mxu1 %v1377_v60  ;;  %1330 = vmatprep.mubr.msk.bf16.mxu1 %vm1544_vm0, %v1543_v0 }
 0x89e   :  { %v1015_v1 = vpop.f32.mrb[24].mxu1 }
 0x89f   :  { %v1021_v2 = vmul.f32 %v1393_v63, %v1015_v1  ;;  %v1326_v3 = vpop.f32.mrb[25].mxu1 }
 0x8a0   :  { %v1018_v4 = vpop.f32.mrb[26].mxu1 }
 0x8a1   :  { %v1022_v5 = vpack.c.bf16 %v1021_v2, %v1021_v2  ;;  %v1327_v6 = vpop.f32.mrb[27].mxu1 }
 0x8a3   :  { %1331 = vmatmul.mubr.msk.bf16.vlgmr.msra.gmra.mrb[12].mxu1 %vm329_vm2, %v1022_v5 }
 0x976   :  { %v1068_v8 = vpop.f32.mrb[12].mxu1 }
 0x977   :  { %v1334_v9 = vadd.f32 %v1108_v7, %v1068_v8  ;;  %v1332_v0 = vpop.f32.mrb[13].mxu1 }
 0x978   :  { %v1071_v10 = vpop.f32.mrb[14].mxu1 }
 0x979   :  { %1075 = vst.msk [vmem:[#allocation11] sm:$0xff] %vm149_vm1, %v1334_v9  ;;  %v1333_v11 = vpop.f32.mrb[15].mxu1 }
 0x97a   :  { %1515 = shalt.err (!%p1512_p2)
}
 0x97b   :  { %s1516_s7 = scalar_lea.hbm %s1887_s8, 128 }
 0x97c   :  { %p1517_p3 = scmp.ne.s32.totalorder %s1887_s8, %s1516_s7  ;;  %p1520_p4 = scmp.lt.u32.totalorder %s1516_s7, %s1887_s8 }
 0x97e   :  { %p1522_p5 = pnand %p1520_p4, %p1517_p3 }
 0x980   :  { %1525 = shalt.err (!%p1522_p5)
}
 0x981   :  { %1085 = dma.vmem_to_hbm [thread:$0]  %s1083_s1, 128, %s1887_s8, [#allocation4]  }
 0x982   :  { %1532 = dma.done.wait [#allocation4], 128  }
 0x983   :  { %1533 = vsyncadd [#allocation4], 4294967168 }
 0x984   :  { %1089 = vsyncpa [#allocation3], 1 }
 0x985   :  { %1090 = vsyncpa [#allocation6], 1 }
 0x986   :  { %1091 = vsyncpa [#allocation9], 1 }
 0x987   :  { %1092 = vsyncpa [#allocation4], 1 }

</bundles_post_ra>
